<compile_context>
chip_gen: v7x
topology: tpu7x:2x2x1
jax: 0.10.0
libtpu: 0.0.40
codegen_flags: <defaults>
</compile_context>

<pallas_src>
import functools

import jax
import jax.numpy as jnp
from jax.experimental import pallas as pl
from jax.experimental.pallas import tpu as pltpu


def _corn_kernel(preds_ref, y_ref, loss_ref, acc_ref, *, tn, k, n_rows):
    b = pl.program_id(0)
    nb = pl.num_programs(0)

    @pl.when(b == 0)
    def _():
        acc_ref[...] = jnp.zeros_like(acc_ref)

    p = preds_ref[...].astype(jnp.float32)                     # (k, tn) logits
    y = y_ref[...]                                             # (1, tn) labels

    # Lane validity for the (possibly partial) last block.
    lane = jax.lax.broadcasted_iota(jnp.int32, (1, tn), 1)
    lane_valid = (b * tn + lane) < n_rows                      # (1, tn)

    # Task index i lives on the sublane axis; tasks exist only for i = 0 .. k-2.
    task = jax.lax.broadcasted_iota(jnp.int32, (k, 1), 0)      # (k, 1)

    mask = lane_valid & (task < (k - 1)) & (y > task - 1)      # (k, tn)
    label = (y > task).astype(jnp.float32)                     # (k, tn)

    # Numerically stable log-sigmoid: min(x, 0) - log1p(exp(-|x|)).
    ls = jnp.minimum(p, 0.0) - jnp.log1p(jnp.exp(-jnp.abs(p)))
    # -(ls*label + (ls - p)*(1 - label))  ==  p*(1 - label) - ls
    term = p * (1.0 - label) - ls
    # Select (not multiply) so garbage in masked / out-of-range lanes cannot
    # leak NaN/inf into the sum.
    term = jnp.where(mask, term, 0.0)

    # Lane reduce -> (k, 1) partial; single-vreg accumulator update per step.
    acc_ref[...] += jnp.sum(term, axis=1, keepdims=True)

    @pl.when(b == nb - 1)
    def _():
        loss_ref[...] = jnp.sum(acc_ref[...], axis=0, keepdims=True)   # (1, 1)


def _round_up(x, m):
    return -(-x // m) * m


def corn_loss(preds: jax.Array, target: jax.Array, *, block_cols: int = 4096) -> jax.Array:
    """Pallas implementation of ludwig CORNLoss.forward(preds, target)."""
    assert preds.ndim == 2, "preds must be (batch, num_classes) logits"
    n, k = preds.shape
    y = target.reshape(-1).astype(jnp.int32)
    assert y.shape[0] == n, "target must have one class label per row of preds"

    # Lane-dense layout: batch on the lane (last) axis.
    preds_t = preds.T                       # (k, n)
    y_row = y.reshape(1, n)                 # (1, n)

    tn = min(block_cols, _round_up(n, 128))        # lanes per block (mult. of 128)
    nblk = pl.cdiv(n, tn)
    itemsize = preds.dtype.itemsize

    kernel = functools.partial(_corn_kernel, tn=tn, k=k, n_rows=n)

    loss_sum = pl.pallas_call(
        kernel,
        out_shape=jax.ShapeDtypeStruct((1, 1), jnp.float32),
        grid_spec=pltpu.PrefetchScalarGridSpec(
            num_scalar_prefetch=0,
            grid=(nblk,),
            in_specs=[pl.BlockSpec((k, tn), lambda b: (0, b)),    # logits (K, TN)
                      pl.BlockSpec((1, tn), lambda b: (0, b))],   # labels (1, TN)
            out_specs=pl.BlockSpec((1, 1), lambda b: (0, 0)),
            scratch_shapes=[pltpu.VMEM((k, 1), jnp.float32)],     # loss accumulator
        ),
        compiler_params=pltpu.CompilerParams(
            dimension_semantics=("arbitrary",)),
        cost_estimate=pl.CostEstimate(
            flops=10 * n * k,
            transcendentals=2 * n * k,
            bytes_accessed=n * k * itemsize + n * 4 + 4),
    )(preds_t, y_row)[0, 0]

    # Exact denominator, computed analytically from target alone (O(N), int32,
    # so it never suffers the f32 +1 rounding past 2^24 elements).
    # TODO(synk): K == 1 means zero ordinal tasks -> 0/0, matching the torch
    # reference's division-by-zero failure mode.
    cnt = jnp.sum(jnp.clip(y + 1, 0, k - 1))
    return loss_sum / cnt.astype(jnp.float32)


if __name__ == "__main__":
    key = jax.random.PRNGKey(0)
    k1, k2, k3, k4 = jax.random.split(key, 4)

    def _ref(logits, yy):
        logits = logits.astype(jnp.float32)
        kk = logits.shape[1]
        tot = jnp.float32(0.0)
        cnt = jnp.float32(0.0)
        for i in range(kk - 1):
            mask = yy > i - 1
            label = (yy > i).astype(jnp.float32)
            pred = logits[:, i]
            ls = jax.nn.log_sigmoid(pred)
            per = -(ls * label + (ls - pred) * (1.0 - label))
            tot = tot + jnp.sum(jnp.where(mask, per, 0.0))
            cnt = cnt + jnp.sum(mask.astype(jnp.float32))
        return tot / cnt

    # Small deterministic case matching the module's (batch, num_classes) logits.
    batch, num_classes = 64, 5
    preds = jax.random.normal(k1, (batch, num_classes), dtype=jnp.float32)
    target = jax.random.randint(k2, (batch,), 0, num_classes, dtype=jnp.int32)
    loss = jax.block_until_ready(corn_loss(preds, target))
    ref = _ref(preds, target)
    assert jnp.allclose(loss, ref, rtol=1e-5, atol=1e-5), (loss, ref)

    # Ragged multi-block case: exercises tail-lane masking and bf16 logits.
    batch2, classes2 = 1000, 7
    preds2 = jax.random.normal(k3, (batch2, classes2), dtype=jnp.bfloat16)
    target2 = jax.random.randint(k4, (batch2,), 0, classes2, dtype=jnp.int32)
    loss2 = jax.block_until_ready(corn_loss(preds2, target2, block_cols=256))
    ref2 = _ref(preds2, target2)
    assert jnp.allclose(loss2, ref2, rtol=1e-4, atol=1e-4), (loss2, ref2)

    print("KERNEL_OK")
</pallas_src>

<mosaic_0001>
module attributes {stable_mosaic.version = 11 : i64} {
  func.func @_corn_kernel(%arg0: i32, %arg1: memref<5x128xf32, #tpu.memory_space<vmem>>, %arg2: memref<1x128xi32, #tpu.memory_space<vmem>>, %arg3: memref<1x1xf32, #tpu.memory_space<vmem>>, %arg4: memref<5x1xf32, #tpu.memory_space<vmem>>) attributes {dimension_semantics = [#tpu.dimension_semantics<arbitrary>], iteration_bounds = array<i64: 1>, scalar_prefetch = 0 : i64, scratch_operands = 1 : i64, tpu.core_type = #tpu.core_type<tc>, window_params = [{transform_indices = @transform_0, window_bounds = array<i64: 5, 128>}, {transform_indices = @transform_1, window_bounds = array<i64: 1, 128>}, {pipeline_mode = #tpu.pipeline_mode<synchronous>, transform_indices = @transform_2, window_bounds = array<i64: 1, 1>}]} {
    %c0_i32 = arith.constant 0 : i32
    %0 = arith.cmpi eq, %arg0, %c0_i32 : i32
    %1 = arith.extui %0 : i1 to i32
    %c0_i32_0 = arith.constant 0 : i32
    %2 = arith.cmpi ne, %1, %c0_i32_0 : i32
    scf.if %2 {
      %cst_14 = arith.constant 0.000000e+00 : f32
      %50 = vector.broadcast %cst_14 : f32 to vector<5x1xf32>
      %c0_15 = arith.constant 0 : index
      %c0_16 = arith.constant 0 : index
      %51 = vector.load %arg4[%c0_15, %c0_16] : memref<5x1xf32, #tpu.memory_space<vmem>>, vector<5x1xf32>
      tpu.vector_store %arg4[%c0_15, %c0_16], %50 {strides = array<i32>} : memref<5x1xf32, #tpu.memory_space<vmem>>, vector<5x1xf32>,
    } else {
    }
    %c0 = arith.constant 0 : index
    %c0_1 = arith.constant 0 : index
    %3 = vector.load %arg1[%c0, %c0_1] : memref<5x128xf32, #tpu.memory_space<vmem>>, vector<5x128xf32>
    %c0_2 = arith.constant 0 : index
    %c0_3 = arith.constant 0 : index
    %4 = vector.load %arg2[%c0_2, %c0_3] : memref<1x128xi32, #tpu.memory_space<vmem>>, vector<1x128xi32>
    %5 = tpu.iota {dimensions = array<i32: 1>} : vector<1x128xi32>
    %c128_i32 = arith.constant 128 : i32
    %6 = arith.muli %arg0, %c128_i32 : i32
    %7 = vector.broadcast %6 : i32 to vector<1x128xi32>
    %8 = arith.addi %7, %5 : vector<1x128xi32>
    %c64_i32 = arith.constant 64 : i32
    %9 = vector.broadcast %c64_i32 : i32 to vector<1x128xi32>
    %10 = arith.cmpi slt, %8, %9 : vector<1x128xi32>
    %11 = tpu.iota {dimensions = array<i32: 0>} : vector<5x1xi32>
    %c4_i32 = arith.constant 4 : i32
    %12 = vector.broadcast %c4_i32 : i32 to vector<5x1xi32>
    %13 = arith.cmpi slt, %11, %12 : vector<5x1xi32>
    %14 = vector.broadcast %10 : vector<1x128xi1> to vector<5x128xi1>
    %15 = vector.broadcast %13 : vector<5x1xi1> to vector<5x128xi1>
    %16 = arith.andi %14, %15 : vector<5x128xi1>
    %c1_i32 = arith.constant 1 : i32
    %17 = vector.broadcast %c1_i32 : i32 to vector<5x1xi32>
    %18 = arith.subi %11, %17 : vector<5x1xi32>
    %19 = vector.broadcast %4 : vector<1x128xi32> to vector<5x128xi32>
    %20 = vector.broadcast %18 : vector<5x1xi32> to vector<5x128xi32>
    %21 = arith.cmpi sgt, %19, %20 : vector<5x128xi32>
    %22 = arith.andi %16, %21 : vector<5x128xi1>
    %23 = vector.broadcast %4 : vector<1x128xi32> to vector<5x128xi32>
    %24 = vector.broadcast %11 : vector<5x1xi32> to vector<5x128xi32>
    %25 = arith.cmpi sgt, %23, %24 : vector<5x128xi32>
    %26 = arith.extui %25 : vector<5x128xi1> to vector<5x128xi32>
    %27 = arith.sitofp %26 : vector<5x128xi32> to vector<5x128xf32>
    %cst = arith.constant 0.000000e+00 : f32
    %28 = vector.broadcast %cst : f32 to vector<5x128xf32>
    %29 = arith.minimumf %3, %28 : vector<5x128xf32>
    %30 = math.absf %3 : vector<5x128xf32>
    %cst_4 = arith.constant 0.000000e+00 : f32
    %31 = vector.broadcast %cst_4 : f32 to vector<5x128xf32>
    %32 = arith.subf %31, %30 : vector<5x128xf32>
    %33 = math.exp %32 : vector<5x128xf32>
    %34 = math.log1p %33 : vector<5x128xf32>
    %35 = arith.subf %29, %34 : vector<5x128xf32>
    %cst_5 = arith.constant 1.000000e+00 : f32
    %36 = vector.broadcast %cst_5 : f32 to vector<5x128xf32>
    %37 = arith.subf %36, %27 : vector<5x128xf32>
    %38 = arith.mulf %3, %37 : vector<5x128xf32>
    %39 = arith.subf %38, %35 : vector<5x128xf32>
    %cst_6 = arith.constant 0.000000e+00 : f32
    %40 = vector.broadcast %cst_6 : f32 to vector<5x128xf32>
    %41 = arith.select %22, %39, %40 : vector<5x128xi1>, vector<5x128xf32>
    %c0_7 = arith.constant 0 : index
    %c0_8 = arith.constant 0 : index
    %42 = vector.load %arg4[%c0_7, %c0_8] : memref<5x1xf32, #tpu.memory_space<vmem>>, vector<5x1xf32>
    %cst_9 = arith.constant dense<0.000000e+00> : vector<5xf32>
    %43 = vector.multi_reduction <add>, %41, %cst_9 [1] : vector<5x128xf32> to vector<5xf32>
    %44 = vector.shape_cast %43 : vector<5xf32> to vector<5x1xf32>
    %45 = arith.addf %42, %44 : vector<5x1xf32>
    %c0_10 = arith.constant 0 : index
    %c0_11 = arith.constant 0 : index
    %46 = vector.load %arg4[%c0_10, %c0_11] : memref<5x1xf32, #tpu.memory_space<vmem>>, vector<5x1xf32>
    tpu.vector_store %arg4[%c0_10, %c0_11], %45 {strides = array<i32>} : memref<5x1xf32, #tpu.memory_space<vmem>>, vector<5x1xf32>,
    %c0_i32_12 = arith.constant 0 : i32
    %47 = arith.cmpi eq, %arg0, %c0_i32_12 : i32
    %48 = arith.extui %47 : i1 to i32
    %c0_i32_13 = arith.constant 0 : i32
    %49 = arith.cmpi ne, %48, %c0_i32_13 : i32
    scf.if %49 {
      %c0_14 = arith.constant 0 : index
      %c0_15 = arith.constant 0 : index
      %50 = vector.load %arg4[%c0_14, %c0_15] : memref<5x1xf32, #tpu.memory_space<vmem>>, vector<5x1xf32>
      %cst_16 = arith.constant dense<0.000000e+00> : vector<1xf32>
      %51 = vector.multi_reduction <add>, %50, %cst_16 [0] : vector<5x1xf32> to vector<1xf32>
      %52 = vector.shape_cast %51 : vector<1xf32> to vector<1x1xf32>
      %c0_17 = arith.constant 0 : index
      %c0_18 = arith.constant 0 : index
      %53 = vector.load %arg3[%c0_17, %c0_18] : memref<1x1xf32, #tpu.memory_space<vmem>>, vector<1x1xf32>
      tpu.vector_store %arg3[%c0_17, %c0_18], %52 {strides = array<i32>} : memref<1x1xf32, #tpu.memory_space<vmem>>, vector<1x1xf32>,
    } else {
    }
    return
  }
  func.func @transform_0(%arg0: i32) -> (i32, i32) {
    %c0_i32 = arith.constant 0 : i32
    %c0_i32_0 = arith.constant 0 : i32
    return %c0_i32, %arg0 : i32, i32
  }
  func.func @transform_1(%arg0: i32) -> (i32, i32) {
    %c0_i32 = arith.constant 0 : i32
    %c0_i32_0 = arith.constant 0 : i32
    return %c0_i32, %arg0 : i32, i32
  }
  func.func @transform_2(%arg0: i32) -> (i32, i32) {
    %c0_i32 = arith.constant 0 : i32
    %c0_i32_0 = arith.constant 0 : i32
    %c0_i32_1 = arith.constant 0 : i32
    return %c0_i32, %c0_i32_0 : i32, i32
  }
}

</mosaic_0001>

<bundles_post_ra>
// kernel: tpu_custom_call.1
= control target key start
LH: loop header
LB: loop body
LE: loop exit
PB: predicated region body
PF: predicated region fallthrough
CT: control target
= control target key end

     0   :  { %7 = vsyncpa [#allocation4], 0  ;;  %s217_s0 = inlined_call_operand.hbm [shape: f32[5,64], index: 0, kind: input, shape index: {}]   ;;  %s218_s1 = inlined_call_operand.vmem [shape: s32[1,64], index: 1, kind: input, shape index: {}]   ;;  %s219_s2 = inlined_call_operand.hbm [shape: f32[1,1], index: 2, kind: output, shape index: {}]  }
   0x1   :  { %8 = vsyncpa [#allocation5], 0  ;;  %s169_s9 = smov [#allocation3]   ;;  %s121_s13 = scalar_lea.hbm %s217_s0, 128 }
   0x2   :  { %s15_s10 = sshll.u32 %s169_s9, 4  ;;  %p122_p0 = scmp.ne.s32.totalorder %s217_s0, %s121_s13  ;;  %s16_s10 = int_to_ptr.vmem [resolvable:$true] %s15_s10 }
   0x3   :  { %p125_p1 = scmp.lt.u32.totalorder %s121_s13, %s217_s0 }
   0x5   :  { %p127_p2 = pnand %p125_p1, %p122_p0 }
   0x7   :  { %130 = shalt.err (!%p127_p2)
}
   0x8   :  { %s131_s18 = scalar_lea.vmem %s16_s10, 128  ;;  %p136_p4 = scmp.lt.s32.totalorder %s16_s10, %s16_s10 }
   0x9   :  { %p132_p3 = scmp.ne.s32.totalorder %s16_s10, %s131_s18  ;;  %p137_p5 = scmp.lt.s32.totalorder %s131_s18, %s131_s18 }
   0xb   :  { %p138_p6 = por %p137_p5, %p136_p4 }
   0xd   :  { %p139_p7 = pnand %p138_p6, %p132_p3 }
   0xf   :  { %142 = shalt.err (!%p139_p7)
}
  0x10   :  { %18 = dma.hbm_to_vmem [thread:$0]  %s217_s0, 128, %s16_s10, [#allocation4]  }
  0x11   :  { %165 = dma.done.wait [#allocation4], 128  }
  0x12   :  { %166 = vsyncadd [#allocation4], 4294967168  ;;  %vm28_vm0 = vcmask 4096   ;;  %v170_v0 = vmov 0.0   ;;  %v30_v1 = vld [vmem:[#allocation3] sm:$0x1f]  ;;  %v32_v5 = vlaneseq }
  0x13   :  { %29 = vst.msk [vmem:[#allocation2] sm:$0x1f] %vm28_vm0, %v170_v0  ;;  %v57_v2 = vand.u32 2147483647, %v30_v1  ;;  %v112_v9 = vld [vmem:[%s218_s1] ss:$0 sm:$0xff] }
  0x14   :  { %v39_v7 = vshrl.u32 %v32_v5, 7  ;;  %v33_v11 = vand.u32 127, %v32_v5  ;;  %v56_v19 = vmin.f32 %v30_v1, 0.0  ;;  %vm76_vm8 = vcmask 1044480   ;;  %s171_s0 = smov [#allocation6]  }
  0x15   :  { %v58_v3 = vsub.f32 0.0, %v57_v2  ;;  %s102_s1 = sshll.u32 %s171_s0, 4  ;;  %vm94_vm9 = vcmask 0   ;;  %s103_s1 = int_to_ptr.vmem [resolvable:$true] %s102_s1 }
  0x16   :  { %vm53_vm1 = vcmp.gt.s32.totalorder %v112_v9, %v39_v7  ;;  %v111_v15 = vadd.s32 4294967295, %v39_v7  ;;  %vm37_vm2 = vcmp.lt.s32.totalorder %v33_v11, 64  ;;  %vm40_vm3 = vcmp.lt.s32.totalorder %v39_v7, 4  ;;  %s143_s23 = scalar_lea.vmem %s103_s1, 16  ;;  %s147_s24 = scalar_lea.vmem %s103_s1, 32 }
  0x17   :  { %v59_v4 = vmul.f32 1.442695, %v58_v3  ;;  %v113_v12 = vsel %vm53_vm1, 1.0, %v170_v0  ;;  %vm45_vm5 = vmand %vm37_vm2, %vm40_vm3  ;;  %p144_p8 = scmp.ne.s32.totalorder %s103_s1, %s143_s23  ;;  %p148_p9 = scmp.lt.s32.totalorder %s103_s1, %s103_s1 }
  0x18   :  { %v71_v16 = vsub.f32 1.0, %v113_v12  ;;  %vm51_vm6 = vcmp.gt.s32.totalorder %v112_v9, %v111_v15  ;;  %p149_p10 = scmp.lt.s32.totalorder %s147_s24, %s143_s23 }
  0x19   :  { %117 = vpow2.f32 %v59_v4  ;;  %vm52_vm7 = vmand %vm45_vm5, %vm51_vm6 }
  0x1a   :  { %v72_v21 = vmul.f32 %v71_v16, %v30_v1  ;;  %v75_v27 = vld [vmem:[#allocation2] sm:$0x1f]  ;;  %p150_p11 = por %p149_p10, %p148_p9 }
  0x1c   :  { %p151_p12 = pnand %p150_p11, %p144_p8 }
  0x23   :  { %v118_v6 = vpop.eup %117 }
  0x24   :  { %v61_v8 = vadd.f32 1.0, %v118_v6  ;;  %v64_v10 = vmul.f32 -0.5, %v118_v6  ;;  %v67_v14 = vand.u32 2147483647, %v118_v6 }
  0x26   :  { %119 = vlog2.f32 %v61_v8  ;;  %v65_v13 = vadd.f32 1.0, %v64_v10  ;;  %vm68_vm4 = vcmp.lt.f32.partialorder %v67_v14, 0.0004427343 }
  0x28   :  { %v66_v17 = vmul.f32 %v118_v6, %v65_v13 }
  0x30   :  { %v120_v18 = vpop.eup %119 }
  0x31   :  { %v63_v20 = vmul.f32 0.6931472, %v120_v18 }
  0x33   :  { %v69_v22 = vsel %vm68_vm4, %v66_v17, %v63_v20 }
  0x34   :  { %v70_v23 = vsub.f32 %v56_v19, %v69_v22 }
  0x36   :  { %v73_v24 = vsub.f32 %v72_v21, %v70_v23 }
  0x38   :  { %v74_v25 = vsel %vm52_vm7, %v73_v24, 0.0 }
  0x39   :  { %v77_v26 = vsel %vm76_vm8, %v74_v25, 0.0 }
  0x3a   :  { %78 = vadd.xlane.f32.xlu0 %v77_v26 }
  0xc7   :  { %v79_v28 = vpop.xlane.xlu0 %78 }
  0xc8   :  { %v80_v29 = vadd.f32 %v79_v28, %v75_v27 }
  0xca   :  { %82 = vst.msk [vmem:[#allocation2] sm:$0x1f] %vm28_vm0, %v80_v29 }
  0xd1   :  { %v86_v30 = vld [vmem:[#allocation2] sm:$0x1f] }
  0xd2   :  { %v87_v31 = vsel %vm28_vm0, %v86_v30, 0.0 }
  0xd3   :  { %v88_v32 = vrot.slane %v87_v31, 4 }
  0xd5   :  { %v89_v33 = vadd.f32 %v88_v32, %v87_v31 }
  0xd7   :  { %v90_v34 = vrot.slane %v89_v33, 2 }
  0xd9   :  { %v91_v35 = vadd.f32 %v90_v34, %v89_v33 }
  0xdb   :  { %v92_v36 = vrot.slane %v91_v35, 1 }
  0xdd   :  { %v93_v37 = vadd.f32 %v92_v36, %v91_v35 }
  0xdf   :  { %95 = vst.msk [vmem:[#allocation6] sm:$0x1] %vm94_vm9, %v93_v37 }
  0xe0   :  { %154 = shalt.err (!%p151_p12)
}
  0xe1   :  { %s155_s27 = scalar_lea.hbm %s219_s2, 16 }
  0xe2   :  { %p156_p13 = scmp.ne.s32.totalorder %s219_s2, %s155_s27  ;;  %p159_p0 = scmp.lt.u32.totalorder %s155_s27, %s219_s2 }
  0xe4   :  { %p161_p1 = pnand %p159_p0, %p156_p13 }
  0xe6   :  { %164 = shalt.err (!%p161_p1)
}
  0xe7   :  { %105 = dma.vmem_to_hbm [thread:$0]  %s103_s1, 16, %s219_s2, [#allocation5]  }
  0xe8   :  { %167 = dma.done.wait [#allocation5], 16  }
  0xe9   :  { %168 = vsyncadd [#allocation5], 4294967280 }
  0xea   :  { %109 = vsyncpa [#allocation4], 1 }
  0xeb   :  { %110 = vsyncpa [#allocation5], 1 }

</bundles_post_ra>
